<compile_context>
chip_gen: v7x
topology: tpu7x:2x2x1
jax: 0.10.0
libtpu: 0.0.40
codegen_flags: <defaults>
</compile_context>

<pallas_src>
import jax
import jax.numpy as jnp
from jax import lax
from jax.experimental import pallas as pl
from jax.experimental.pallas import tpu as pltpu


def lstm_timeseq_kernel(x_ref, wih_ref, whh_ref, b_ref, wlin_ref, blin_ref,
                        out_ref):
    """One batch-block of TB independent sequences, full T-step recurrence.

    x_ref:    (TB, T)   inputs (input_size == 1); sublane = sequence, lane = time
    wih_ref:  (1, 4H)   W_ih^T, i/f/o columns pre-scaled by 0.5
    whh_ref:  (H, 4H)   W_hh^T, i/f/o columns pre-scaled by 0.5
    b_ref:    (1, 4H)   b_ih + b_hh, i/f/o columns pre-scaled by 0.5
    wlin_ref: (O, H)    final Linear weight (PyTorch layout)
    blin_ref: (1, O)    final Linear bias
    out_ref:  (TB, O)   prediction at the last time step, per sequence
    """
    TB, T = x_ref.shape
    H = whh_ref.shape[0]

    xv = x_ref[...]                     # (TB, T)  one (8,128)-padded vreg
    wih = wih_ref[...]                  # (1, 4H)
    bb = b_ref[...]                     # (1, 4H)
    whh = whh_ref[...]                  # (H, 4H)  resident across the loop

    # Hoisted input projection: independent of h/c, computed up front into
    # registers (pure VPU broadcast multiply-add for input_size == 1; a
    # (TB,1)x(1,4H) MXU dot would be pure fill/drain).  No VMEM scratch.
    xw = [xv[:, t:t + 1] * wih + bb for t in range(T)]      # T x (TB, 4H)

    h = jnp.zeros((TB, H), jnp.float32)
    c = jnp.zeros((TB, H), jnp.float32)

    # T is static and small -> full unroll with static step indices; the only
    # serial dependence left per step is one (TB,H)x(H,4H) MXU dot plus two
    # EUP passes (tanh(gates), tanh(c_new)).
    for t in range(T):
        gates = xw[t] + jnp.dot(h, whh, preferred_element_type=jnp.float32)
        # Single full-width tanh over the (TB, 4H) tile.  i/f/o columns were
        # pre-scaled by 0.5, so sigmoid(z) == 0.5*tanh(z/2) + 0.5 is recovered
        # with a VPU affine -- one EUP pass instead of two for the gates.
        th = jnp.tanh(gates)
        i_g = 0.5 * th[:, 0 * H:1 * H] + 0.5
        f_g = 0.5 * th[:, 1 * H:2 * H] + 0.5
        g_g = th[:, 2 * H:3 * H]
        o_g = 0.5 * th[:, 3 * H:4 * H] + 0.5
        c = f_g * c + i_g * g_g
        h = o_g * jnp.tanh(c)

    # Final Linear.  For output_size == 1 a (TB,H)x(H,1) MXU dot is a full
    # fill/drain for one scalar column; do it as VPU multiply + XLU lane reduce.
    if wlin_ref.shape[0] == 1:
        out = jnp.sum(h * wlin_ref[...], axis=-1, keepdims=True) + blin_ref[...]
    else:
        out = (jnp.dot(h, wlin_ref[...].T, preferred_element_type=jnp.float32)
               + blin_ref[...])
    out_ref[...] = out.astype(out_ref.dtype)


def lstm_timeseq_forward_batched(input_seqs, params, *, seq_block=8):
    """input_seqs: [B, T] float32.  Returns [B, output_size]: the prediction at
    the last time step of each sequence, each starting from the zero state
    (== LSTM_timeseq.forward applied independently per sequence)."""
    w_ih_t, w_hh_t, b, w_lin, b_lin = params
    I = w_ih_t.shape[0]
    H = w_hh_t.shape[0]
    O = w_lin.shape[0]
    assert I == 1, "batched kernel implements the module default input_size=1"

    B, T = input_seqs.shape
    TB = min(seq_block, max(B, 1))
    pad = (-B) % TB
    if pad:
        input_seqs = jnp.pad(input_seqs, ((0, pad), (0, 0)))
    NB = (B + pad) // TB

    # (NB, TB, T): sequences of a block on sublanes, time on lanes.
    x = input_seqs.reshape(NB, TB, T).astype(jnp.float32)

    out = pl.pallas_call(
        lstm_timeseq_kernel,
        out_shape=jax.ShapeDtypeStruct((NB, TB, O), jnp.float32),
        grid=(NB,),
        in_specs=[
            pl.BlockSpec((None, TB, T), lambda i: (i, 0, 0)),
            # Weights/bias: constant block index -> loaded once, stay resident.
            pl.BlockSpec((I, 4 * H), lambda i: (0, 0)),
            pl.BlockSpec((H, 4 * H), lambda i: (0, 0)),
            pl.BlockSpec((1, 4 * H), lambda i: (0, 0)),
            pl.BlockSpec((O, H), lambda i: (0, 0)),
            pl.BlockSpec((1, O), lambda i: (0, 0)),
        ],
        out_specs=pl.BlockSpec((None, TB, O), lambda i: (i, 0, 0)),
        compiler_params=pltpu.CompilerParams(
            dimension_semantics=("parallel",)),   # shard batch blocks over TCs
    )(x, w_ih_t, w_hh_t, b, w_lin, b_lin)

    return out.reshape(NB * TB, O)[:B]


def lstm_timeseq_forward(input_seq, params):
    """Single-sequence forward matching LSTM_timeseq.forward: predictions[-1],
    shape [output_size].
    TODO(synk): persistent self.hidden_cell across calls is not modeled; each
    call starts from the zero hidden/cell state."""
    out = lstm_timeseq_forward_batched(input_seq.reshape(1, -1), params)
    return out[0]


def init_params(key, input_size, hidden_size, output_size):
    """Deterministic init in PyTorch layout:
    (w_ih (4H,I), w_hh (4H,H), b_ih (4H,), b_hh (4H,), w_lin (O,H), b_lin (O,))."""
    ks = jax.random.split(key, 6)
    s = 1.0 / jnp.sqrt(hidden_size)
    w_ih = jax.random.uniform(ks[0], (4 * hidden_size, input_size), jnp.float32, -s, s)
    w_hh = jax.random.uniform(ks[1], (4 * hidden_size, hidden_size), jnp.float32, -s, s)
    b_ih = jax.random.uniform(ks[2], (4 * hidden_size,), jnp.float32, -s, s)
    b_hh = jax.random.uniform(ks[3], (4 * hidden_size,), jnp.float32, -s, s)
    w_lin = jax.random.uniform(ks[4], (output_size, hidden_size), jnp.float32, -s, s)
    b_lin = jax.random.uniform(ks[5], (output_size,), jnp.float32, -s, s)
    return (w_ih, w_hh, b_ih, b_hh, w_lin, b_lin)


def prepare_params(raw):
    """PyTorch-layout params -> kernel layout.

    * transpose W_ih / W_hh, fold b_ih + b_hh
    * pre-scale the i/f/o gate rows by 0.5 so the kernel can use the exact
      identity sigmoid(z) = 0.5 * tanh(z/2) + 0.5 with one tanh pass per step
    * keep the Linear weight in (O, H) layout for the VPU/XLU projection
    """
    w_ih, w_hh, b_ih, b_hh, w_lin, b_lin = raw
    H = w_hh.shape[1]
    gate_scale = jnp.concatenate([
        jnp.full((H,), 0.5, jnp.float32),   # i
        jnp.full((H,), 0.5, jnp.float32),   # f
        jnp.ones((H,), jnp.float32),        # g (tanh gate, unscaled)
        jnp.full((H,), 0.5, jnp.float32),   # o
    ])
    b = (b_ih + b_hh) * gate_scale
    return ((w_ih * gate_scale[:, None]).T,    # (I, 4H)
            (w_hh * gate_scale[:, None]).T,    # (H, 4H)
            b.reshape(1, -1),                  # (1, 4H)
            w_lin,                             # (O, H)
            b_lin.reshape(1, -1))              # (1, O)


def reference_forward(input_seq, raw_params):
    """Pure-JAX reference of the PyTorch forward (zero initial state)."""
    w_ih, w_hh, b_ih, b_hh, w_lin, b_lin = raw_params
    H = w_hh.shape[1]
    I = w_ih.shape[1]
    x = input_seq.reshape(-1, I).astype(jnp.float32)

    def step(carry, x_t):
        h, c = carry
        gates = x_t @ w_ih.T + h @ w_hh.T + b_ih + b_hh
        i_g = jax.nn.sigmoid(gates[0 * H:1 * H])
        f_g = jax.nn.sigmoid(gates[1 * H:2 * H])
        g_g = jnp.tanh(gates[2 * H:3 * H])
        o_g = jax.nn.sigmoid(gates[3 * H:4 * H])
        c = f_g * c + i_g * g_g
        h = o_g * jnp.tanh(c)
        return (h, c), None

    h0 = jnp.zeros((H,), jnp.float32)
    c0 = jnp.zeros((H,), jnp.float32)
    (h_last, _), _ = lax.scan(step, (h0, c0), x)
    return h_last @ w_lin.T + b_lin


if __name__ == "__main__":
    INPUT_SIZE = 1
    HIDDEN = 32          # 4H = 128 -> gate tile is exactly lane-aligned
    OUTPUT_SIZE = 1
    SEQ_LEN = 8
    BATCH = 16           # 2 batch-blocks of 8 -> grid=(2,), "parallel"

    key = jax.random.PRNGKey(0)
    k_params, k_x = jax.random.split(key)
    raw = init_params(k_params, INPUT_SIZE, HIDDEN, OUTPUT_SIZE)
    params = prepare_params(raw)

    seqs = jax.random.normal(k_x, (BATCH, SEQ_LEN), jnp.float32)

    # Batched kernel: 16 independent sequences in one pallas_call.
    preds = lstm_timeseq_forward_batched(seqs, params, seq_block=8)
    preds = jax.block_until_ready(preds)
    assert preds.shape == (BATCH, OUTPUT_SIZE)

    ref = jax.vmap(lambda s: reference_forward(s, raw))(seqs)
    assert jnp.allclose(preds, ref, atol=1e-4, rtol=1e-4), (preds, ref)

    # Single-sequence path == the PyTorch module forward (predictions[-1]).
    one = lstm_timeseq_forward(seqs[0], params)
    one = jax.block_until_ready(one)
    assert one.shape == (OUTPUT_SIZE,)
    assert jnp.allclose(one, ref[0], atol=1e-4, rtol=1e-4), (one, ref[0])

    print("KERNEL_OK")
</pallas_src>

<mosaic_0001>
module attributes {stable_mosaic.version = 11 : i64} {
  func.func @lstm_timeseq_kernel(%arg0: i32, %arg1: memref<1x8x8xf32, #tpu.memory_space<vmem>>, %arg2: memref<1x128xf32, #tpu.memory_space<vmem>>, %arg3: memref<32x128xf32, #tpu.memory_space<vmem>>, %arg4: memref<1x128xf32, #tpu.memory_space<vmem>>, %arg5: memref<1x32xf32, #tpu.memory_space<vmem>>, %arg6: memref<1x1xf32, #tpu.memory_space<vmem>>, %arg7: memref<1x8x1xf32, #tpu.memory_space<vmem>>) attributes {dimension_semantics = [#tpu.dimension_semantics<parallel>], iteration_bounds = array<i64: 2>, scalar_prefetch = 0 : i64, scratch_operands = 0 : i64, tpu.core_type = #tpu.core_type<tc>, window_params = [{transform_indices = @transform_0, window_bounds = array<i64: 1, 8, 8>}, {pipeline_mode = #tpu.pipeline_mode<synchronous>, transform_indices = @transform_1, window_bounds = array<i64: 1, 128>}, {pipeline_mode = #tpu.pipeline_mode<synchronous>, transform_indices = @transform_2, window_bounds = array<i64: 32, 128>}, {pipeline_mode = #tpu.pipeline_mode<synchronous>, transform_indices = @transform_3, window_bounds = array<i64: 1, 128>}, {pipeline_mode = #tpu.pipeline_mode<synchronous>, transform_indices = @transform_4, window_bounds = array<i64: 1, 32>}, {pipeline_mode = #tpu.pipeline_mode<synchronous>, transform_indices = @transform_5, window_bounds = array<i64: 1, 1>}, {transform_indices = @transform_6, window_bounds = array<i64: 1, 8, 1>}]} {
    %c0 = arith.constant 0 : index
    %c0_0 = arith.constant 0 : index
    %c0_1 = arith.constant 0 : index
    %0 = vector.load %arg1[%c0, %c0_0, %c0_1] : memref<1x8x8xf32, #tpu.memory_space<vmem>>, vector<1x8x8xf32>
    %1 = vector.shape_cast %0 : vector<1x8x8xf32> to vector<8x8xf32>
    %c0_2 = arith.constant 0 : index
    %c0_3 = arith.constant 0 : index
    %2 = vector.load %arg2[%c0_2, %c0_3] : memref<1x128xf32, #tpu.memory_space<vmem>>, vector<1x128xf32>
    %c0_4 = arith.constant 0 : index
    %c0_5 = arith.constant 0 : index
    %3 = vector.load %arg4[%c0_4, %c0_5] : memref<1x128xf32, #tpu.memory_space<vmem>>, vector<1x128xf32>
    %c0_6 = arith.constant 0 : index
    %c0_7 = arith.constant 0 : index
    %4 = vector.load %arg3[%c0_6, %c0_7] : memref<32x128xf32, #tpu.memory_space<vmem>>, vector<32x128xf32>
    %5 = vector.extract_strided_slice %1 {offsets = [0, 0], sizes = [8, 1], strides = [1, 1]} : vector<8x8xf32> to vector<8x1xf32>
    %6 = vector.broadcast %5 : vector<8x1xf32> to vector<8x128xf32>
    %7 = vector.broadcast %2 : vector<1x128xf32> to vector<8x128xf32>
    %8 = arith.mulf %6, %7 : vector<8x128xf32>
    %9 = vector.broadcast %3 : vector<1x128xf32> to vector<8x128xf32>
    %10 = arith.addf %8, %9 : vector<8x128xf32>
    %11 = vector.extract_strided_slice %1 {offsets = [0, 1], sizes = [8, 1], strides = [1, 1]} : vector<8x8xf32> to vector<8x1xf32>
    %12 = vector.broadcast %11 : vector<8x1xf32> to vector<8x128xf32>
    %13 = vector.broadcast %2 : vector<1x128xf32> to vector<8x128xf32>
    %14 = arith.mulf %12, %13 : vector<8x128xf32>
    %15 = vector.broadcast %3 : vector<1x128xf32> to vector<8x128xf32>
    %16 = arith.addf %14, %15 : vector<8x128xf32>
    %17 = vector.extract_strided_slice %1 {offsets = [0, 2], sizes = [8, 1], strides = [1, 1]} : vector<8x8xf32> to vector<8x1xf32>
    %18 = vector.broadcast %17 : vector<8x1xf32> to vector<8x128xf32>
    %19 = vector.broadcast %2 : vector<1x128xf32> to vector<8x128xf32>
    %20 = arith.mulf %18, %19 : vector<8x128xf32>
    %21 = vector.broadcast %3 : vector<1x128xf32> to vector<8x128xf32>
    %22 = arith.addf %20, %21 : vector<8x128xf32>
    %23 = vector.extract_strided_slice %1 {offsets = [0, 3], sizes = [8, 1], strides = [1, 1]} : vector<8x8xf32> to vector<8x1xf32>
    %24 = vector.broadcast %23 : vector<8x1xf32> to vector<8x128xf32>
    %25 = vector.broadcast %2 : vector<1x128xf32> to vector<8x128xf32>
    %26 = arith.mulf %24, %25 : vector<8x128xf32>
    %27 = vector.broadcast %3 : vector<1x128xf32> to vector<8x128xf32>
    %28 = arith.addf %26, %27 : vector<8x128xf32>
    %29 = vector.extract_strided_slice %1 {offsets = [0, 4], sizes = [8, 1], strides = [1, 1]} : vector<8x8xf32> to vector<8x1xf32>
    %30 = vector.broadcast %29 : vector<8x1xf32> to vector<8x128xf32>
    %31 = vector.broadcast %2 : vector<1x128xf32> to vector<8x128xf32>
    %32 = arith.mulf %30, %31 : vector<8x128xf32>
    %33 = vector.broadcast %3 : vector<1x128xf32> to vector<8x128xf32>
    %34 = arith.addf %32, %33 : vector<8x128xf32>
    %35 = vector.extract_strided_slice %1 {offsets = [0, 5], sizes = [8, 1], strides = [1, 1]} : vector<8x8xf32> to vector<8x1xf32>
    %36 = vector.broadcast %35 : vector<8x1xf32> to vector<8x128xf32>
    %37 = vector.broadcast %2 : vector<1x128xf32> to vector<8x128xf32>
    %38 = arith.mulf %36, %37 : vector<8x128xf32>
    %39 = vector.broadcast %3 : vector<1x128xf32> to vector<8x128xf32>
    %40 = arith.addf %38, %39 : vector<8x128xf32>
    %41 = vector.extract_strided_slice %1 {offsets = [0, 6], sizes = [8, 1], strides = [1, 1]} : vector<8x8xf32> to vector<8x1xf32>
    %42 = vector.broadcast %41 : vector<8x1xf32> to vector<8x128xf32>
    %43 = vector.broadcast %2 : vector<1x128xf32> to vector<8x128xf32>
    %44 = arith.mulf %42, %43 : vector<8x128xf32>
    %45 = vector.broadcast %3 : vector<1x128xf32> to vector<8x128xf32>
    %46 = arith.addf %44, %45 : vector<8x128xf32>
    %47 = vector.extract_strided_slice %1 {offsets = [0, 7], sizes = [8, 1], strides = [1, 1]} : vector<8x8xf32> to vector<8x1xf32>
    %48 = vector.broadcast %47 : vector<8x1xf32> to vector<8x128xf32>
    %49 = vector.broadcast %2 : vector<1x128xf32> to vector<8x128xf32>
    %50 = arith.mulf %48, %49 : vector<8x128xf32>
    %51 = vector.broadcast %3 : vector<1x128xf32> to vector<8x128xf32>
    %52 = arith.addf %50, %51 : vector<8x128xf32>
    %cst = arith.constant 0.000000e+00 : f32
    %53 = vector.broadcast %cst : f32 to vector<8x32xf32>
    %cst_8 = arith.constant 0.000000e+00 : f32
    %54 = vector.broadcast %cst_8 : f32 to vector<8x32xf32>
    %cst_9 = arith.constant dense<0.000000e+00> : vector<8x128xf32>
    %55 = tpu.matmul %53, %4, %cst_9 {dimension_numbers = #tpu.dot_dimension_numbers<[1], [0], [0], [1], [0, 0, 1, 1], [], []>} : vector<8x32xf32>, vector<32x128xf32>, vector<8x128xf32> -> vector<8x128xf32>
    %56 = arith.addf %10, %55 : vector<8x128xf32>
    %57 = math.tanh %56 : vector<8x128xf32>
    %58 = vector.extract_strided_slice %57 {offsets = [0, 0], sizes = [8, 32], strides = [1, 1]} : vector<8x128xf32> to vector<8x32xf32>
    %cst_10 = arith.constant 5.000000e-01 : f32
    %59 = vector.broadcast %cst_10 : f32 to vector<8x32xf32>
    %60 = arith.mulf %59, %58 : vector<8x32xf32>
    %cst_11 = arith.constant 5.000000e-01 : f32
    %61 = vector.broadcast %cst_11 : f32 to vector<8x32xf32>
    %62 = arith.addf %60, %61 : vector<8x32xf32>
    %63 = vector.extract_strided_slice %57 {offsets = [0, 32], sizes = [8, 32], strides = [1, 1]} : vector<8x128xf32> to vector<8x32xf32>
    %cst_12 = arith.constant 5.000000e-01 : f32
    %64 = vector.broadcast %cst_12 : f32 to vector<8x32xf32>
    %65 = arith.mulf %64, %63 : vector<8x32xf32>
    %cst_13 = arith.constant 5.000000e-01 : f32
    %66 = vector.broadcast %cst_13 : f32 to vector<8x32xf32>
    %67 = arith.addf %65, %66 : vector<8x32xf32>
    %68 = vector.extract_strided_slice %57 {offsets = [0, 64], sizes = [8, 32], strides = [1, 1]} : vector<8x128xf32> to vector<8x32xf32>
    %69 = vector.extract_strided_slice %57 {offsets = [0, 96], sizes = [8, 32], strides = [1, 1]} : vector<8x128xf32> to vector<8x32xf32>
    %cst_14 = arith.constant 5.000000e-01 : f32
    %70 = vector.broadcast %cst_14 : f32 to vector<8x32xf32>
    %71 = arith.mulf %70, %69 : vector<8x32xf32>
    %cst_15 = arith.constant 5.000000e-01 : f32
    %72 = vector.broadcast %cst_15 : f32 to vector<8x32xf32>
    %73 = arith.addf %71, %72 : vector<8x32xf32>
    %74 = arith.mulf %67, %54 : vector<8x32xf32>
    %75 = arith.mulf %62, %68 : vector<8x32xf32>
    %76 = arith.addf %74, %75 : vector<8x32xf32>
    %77 = math.tanh %76 : vector<8x32xf32>
    %78 = arith.mulf %73, %77 : vector<8x32xf32>
    %cst_16 = arith.constant dense<0.000000e+00> : vector<8x128xf32>
    %79 = tpu.matmul %78, %4, %cst_16 {dimension_numbers = #tpu.dot_dimension_numbers<[1], [0], [0], [1], [0, 0, 1, 1], [], []>} : vector<8x32xf32>, vector<32x128xf32>, vector<8x128xf32> -> vector<8x128xf32>
    %80 = arith.addf %16, %79 : vector<8x128xf32>
    %81 = math.tanh %80 : vector<8x128xf32>
    %82 = vector.extract_strided_slice %81 {offsets = [0, 0], sizes = [8, 32], strides = [1, 1]} : vector<8x128xf32> to vector<8x32xf32>
    %cst_17 = arith.constant 5.000000e-01 : f32
    %83 = vector.broadcast %cst_17 : f32 to vector<8x32xf32>
    %84 = arith.mulf %83, %82 : vector<8x32xf32>
    %cst_18 = arith.constant 5.000000e-01 : f32
    %85 = vector.broadcast %cst_18 : f32 to vector<8x32xf32>
    %86 = arith.addf %84, %85 : vector<8x32xf32>
    %87 = vector.extract_strided_slice %81 {offsets = [0, 32], sizes = [8, 32], strides = [1, 1]} : vector<8x128xf32> to vector<8x32xf32>
    %cst_19 = arith.constant 5.000000e-01 : f32
    %88 = vector.broadcast %cst_19 : f32 to vector<8x32xf32>
    %89 = arith.mulf %88, %87 : vector<8x32xf32>
    %cst_20 = arith.constant 5.000000e-01 : f32
    %90 = vector.broadcast %cst_20 : f32 to vector<8x32xf32>
    %91 = arith.addf %89, %90 : vector<8x32xf32>
    %92 = vector.extract_strided_slice %81 {offsets = [0, 64], sizes = [8, 32], strides = [1, 1]} : vector<8x128xf32> to vector<8x32xf32>
    %93 = vector.extract_strided_slice %81 {offsets = [0, 96], sizes = [8, 32], strides = [1, 1]} : vector<8x128xf32> to vector<8x32xf32>
    %cst_21 = arith.constant 5.000000e-01 : f32
    %94 = vector.broadcast %cst_21 : f32 to vector<8x32xf32>
    %95 = arith.mulf %94, %93 : vector<8x32xf32>
    %cst_22 = arith.constant 5.000000e-01 : f32
    %96 = vector.broadcast %cst_22 : f32 to vector<8x32xf32>
    %97 = arith.addf %95, %96 : vector<8x32xf32>
    %98 = arith.mulf %91, %76 : vector<8x32xf32>
    %99 = arith.mulf %86, %92 : vector<8x32xf32>
    %100 = arith.addf %98, %99 : vector<8x32xf32>
    %101 = math.tanh %100 : vector<8x32xf32>
    %102 = arith.mulf %97, %101 : vector<8x32xf32>
    %cst_23 = arith.constant dense<0.000000e+00> : vector<8x128xf32>
    %103 = tpu.matmul %102, %4, %cst_23 {dimension_numbers = #tpu.dot_dimension_numbers<[1], [0], [0], [1], [0, 0, 1, 1], [], []>} : vector<8x32xf32>, vector<32x128xf32>, vector<8x128xf32> -> vector<8x128xf32>
    %104 = arith.addf %22, %103 : vector<8x128xf32>
    %105 = math.tanh %104 : vector<8x128xf32>
    %106 = vector.extract_strided_slice %105 {offsets = [0, 0], sizes = [8, 32], strides = [1, 1]} : vector<8x128xf32> to vector<8x32xf32>
    %cst_24 = arith.constant 5.000000e-01 : f32
    %107 = vector.broadcast %cst_24 : f32 to vector<8x32xf32>
    %108 = arith.mulf %107, %106 : vector<8x32xf32>
    %cst_25 = arith.constant 5.000000e-01 : f32
    %109 = vector.broadcast %cst_25 : f32 to vector<8x32xf32>
    %110 = arith.addf %108, %109 : vector<8x32xf32>
    %111 = vector.extract_strided_slice %105 {offsets = [0, 32], sizes = [8, 32], strides = [1, 1]} : vector<8x128xf32> to vector<8x32xf32>
    %cst_26 = arith.constant 5.000000e-01 : f32
    %112 = vector.broadcast %cst_26 : f32 to vector<8x32xf32>
    %113 = arith.mulf %112, %111 : vector<8x32xf32>
    %cst_27 = arith.constant 5.000000e-01 : f32
    %114 = vector.broadcast %cst_27 : f32 to vector<8x32xf32>
    %115 = arith.addf %113, %114 : vector<8x32xf32>
    %116 = vector.extract_strided_slice %105 {offsets = [0, 64], sizes = [8, 32], strides = [1, 1]} : vector<8x128xf32> to vector<8x32xf32>
    %117 = vector.extract_strided_slice %105 {offsets = [0, 96], sizes = [8, 32], strides = [1, 1]} : vector<8x128xf32> to vector<8x32xf32>
    %cst_28 = arith.constant 5.000000e-01 : f32
    %118 = vector.broadcast %cst_28 : f32 to vector<8x32xf32>
    %119 = arith.mulf %118, %117 : vector<8x32xf32>
    %cst_29 = arith.constant 5.000000e-01 : f32
    %120 = vector.broadcast %cst_29 : f32 to vector<8x32xf32>
    %121 = arith.addf %119, %120 : vector<8x32xf32>
    %122 = arith.mulf %115, %100 : vector<8x32xf32>
    %123 = arith.mulf %110, %116 : vector<8x32xf32>
    %124 = arith.addf %122, %123 : vector<8x32xf32>
    %125 = math.tanh %124 : vector<8x32xf32>
    %126 = arith.mulf %121, %125 : vector<8x32xf32>
    %cst_30 = arith.constant dense<0.000000e+00> : vector<8x128xf32>
    %127 = tpu.matmul %126, %4, %cst_30 {dimension_numbers = #tpu.dot_dimension_numbers<[1], [0], [0], [1], [0, 0, 1, 1], [], []>} : vector<8x32xf32>, vector<32x128xf32>, vector<8x128xf32> -> vector<8x128xf32>
    %128 = arith.addf %28, %127 : vector<8x128xf32>
    %129 = math.tanh %128 : vector<8x128xf32>
    %130 = vector.extract_strided_slice %129 {offsets = [0, 0], sizes = [8, 32], strides = [1, 1]} : vector<8x128xf32> to vector<8x32xf32>
    %cst_31 = arith.constant 5.000000e-01 : f32
    %131 = vector.broadcast %cst_31 : f32 to vector<8x32xf32>
    %132 = arith.mulf %131, %130 : vector<8x32xf32>
    %cst_32 = arith.constant 5.000000e-01 : f32
    %133 = vector.broadcast %cst_32 : f32 to vector<8x32xf32>
    %134 = arith.addf %132, %133 : vector<8x32xf32>
    %135 = vector.extract_strided_slice %129 {offsets = [0, 32], sizes = [8, 32], strides = [1, 1]} : vector<8x128xf32> to vector<8x32xf32>
    %cst_33 = arith.constant 5.000000e-01 : f32
    %136 = vector.broadcast %cst_33 : f32 to vector<8x32xf32>
    %137 = arith.mulf %136, %135 : vector<8x32xf32>
    %cst_34 = arith.constant 5.000000e-01 : f32
    %138 = vector.broadcast %cst_34 : f32 to vector<8x32xf32>
    %139 = arith.addf %137, %138 : vector<8x32xf32>
    %140 = vector.extract_strided_slice %129 {offsets = [0, 64], sizes = [8, 32], strides = [1, 1]} : vector<8x128xf32> to vector<8x32xf32>
    %141 = vector.extract_strided_slice %129 {offsets = [0, 96], sizes = [8, 32], strides = [1, 1]} : vector<8x128xf32> to vector<8x32xf32>
    %cst_35 = arith.constant 5.000000e-01 : f32
    %142 = vector.broadcast %cst_35 : f32 to vector<8x32xf32>
    %143 = arith.mulf %142, %141 : vector<8x32xf32>
    %cst_36 = arith.constant 5.000000e-01 : f32
    %144 = vector.broadcast %cst_36 : f32 to vector<8x32xf32>
    %145 = arith.addf %143, %144 : vector<8x32xf32>
    %146 = arith.mulf %139, %124 : vector<8x32xf32>
    %147 = arith.mulf %134, %140 : vector<8x32xf32>
    %148 = arith.addf %146, %147 : vector<8x32xf32>
    %149 = math.tanh %148 : vector<8x32xf32>
    %150 = arith.mulf %145, %149 : vector<8x32xf32>
    %cst_37 = arith.constant dense<0.000000e+00> : vector<8x128xf32>
    %151 = tpu.matmul %150, %4, %cst_37 {dimension_numbers = #tpu.dot_dimension_numbers<[1], [0], [0], [1], [0, 0, 1, 1], [], []>} : vector<8x32xf32>, vector<32x128xf32>, vector<8x128xf32> -> vector<8x128xf32>
    %152 = arith.addf %34, %151 : vector<8x128xf32>
    %153 = math.tanh %152 : vector<8x128xf32>
    %154 = vector.extract_strided_slice %153 {offsets = [0, 0], sizes = [8, 32], strides = [1, 1]} : vector<8x128xf32> to vector<8x32xf32>
    %cst_38 = arith.constant 5.000000e-01 : f32
    %155 = vector.broadcast %cst_38 : f32 to vector<8x32xf32>
    %156 = arith.mulf %155, %154 : vector<8x32xf32>
    %cst_39 = arith.constant 5.000000e-01 : f32
    %157 = vector.broadcast %cst_39 : f32 to vector<8x32xf32>
    %158 = arith.addf %156, %157 : vector<8x32xf32>
    %159 = vector.extract_strided_slice %153 {offsets = [0, 32], sizes = [8, 32], strides = [1, 1]} : vector<8x128xf32> to vector<8x32xf32>
    %cst_40 = arith.constant 5.000000e-01 : f32
    %160 = vector.broadcast %cst_40 : f32 to vector<8x32xf32>
    %161 = arith.mulf %160, %159 : vector<8x32xf32>
    %cst_41 = arith.constant 5.000000e-01 : f32
    %162 = vector.broadcast %cst_41 : f32 to vector<8x32xf32>
    %163 = arith.addf %161, %162 : vector<8x32xf32>
    %164 = vector.extract_strided_slice %153 {offsets = [0, 64], sizes = [8, 32], strides = [1, 1]} : vector<8x128xf32> to vector<8x32xf32>
    %165 = vector.extract_strided_slice %153 {offsets = [0, 96], sizes = [8, 32], strides = [1, 1]} : vector<8x128xf32> to vector<8x32xf32>
    %cst_42 = arith.constant 5.000000e-01 : f32
    %166 = vector.broadcast %cst_42 : f32 to vector<8x32xf32>
    %167 = arith.mulf %166, %165 : vector<8x32xf32>
    %cst_43 = arith.constant 5.000000e-01 : f32
    %168 = vector.broadcast %cst_43 : f32 to vector<8x32xf32>
    %169 = arith.addf %167, %168 : vector<8x32xf32>
    %170 = arith.mulf %163, %148 : vector<8x32xf32>
    %171 = arith.mulf %158, %164 : vector<8x32xf32>
    %172 = arith.addf %170, %171 : vector<8x32xf32>
    %173 = math.tanh %172 : vector<8x32xf32>
    %174 = arith.mulf %169, %173 : vector<8x32xf32>
    %cst_44 = arith.constant dense<0.000000e+00> : vector<8x128xf32>
    %175 = tpu.matmul %174, %4, %cst_44 {dimension_numbers = #tpu.dot_dimension_numbers<[1], [0], [0], [1], [0, 0, 1, 1], [], []>} : vector<8x32xf32>, vector<32x128xf32>, vector<8x128xf32> -> vector<8x128xf32>
    %176 = arith.addf %40, %175 : vector<8x128xf32>
    %177 = math.tanh %176 : vector<8x128xf32>
    %178 = vector.extract_strided_slice %177 {offsets = [0, 0], sizes = [8, 32], strides = [1, 1]} : vector<8x128xf32> to vector<8x32xf32>
    %cst_45 = arith.constant 5.000000e-01 : f32
    %179 = vector.broadcast %cst_45 : f32 to vector<8x32xf32>
    %180 = arith.mulf %179, %178 : vector<8x32xf32>
    %cst_46 = arith.constant 5.000000e-01 : f32
    %181 = vector.broadcast %cst_46 : f32 to vector<8x32xf32>
    %182 = arith.addf %180, %181 : vector<8x32xf32>
    %183 = vector.extract_strided_slice %177 {offsets = [0, 32], sizes = [8, 32], strides = [1, 1]} : vector<8x128xf32> to vector<8x32xf32>
    %cst_47 = arith.constant 5.000000e-01 : f32
    %184 = vector.broadcast %cst_47 : f32 to vector<8x32xf32>
    %185 = arith.mulf %184, %183 : vector<8x32xf32>
    %cst_48 = arith.constant 5.000000e-01 : f32
    %186 = vector.broadcast %cst_48 : f32 to vector<8x32xf32>
    %187 = arith.addf %185, %186 : vector<8x32xf32>
    %188 = vector.extract_strided_slice %177 {offsets = [0, 64], sizes = [8, 32], strides = [1, 1]} : vector<8x128xf32> to vector<8x32xf32>
    %189 = vector.extract_strided_slice %177 {offsets = [0, 96], sizes = [8, 32], strides = [1, 1]} : vector<8x128xf32> to vector<8x32xf32>
    %cst_49 = arith.constant 5.000000e-01 : f32
    %190 = vector.broadcast %cst_49 : f32 to vector<8x32xf32>
    %191 = arith.mulf %190, %189 : vector<8x32xf32>
    %cst_50 = arith.constant 5.000000e-01 : f32
    %192 = vector.broadcast %cst_50 : f32 to vector<8x32xf32>
    %193 = arith.addf %191, %192 : vector<8x32xf32>
    %194 = arith.mulf %187, %172 : vector<8x32xf32>
    %195 = arith.mulf %182, %188 : vector<8x32xf32>
    %196 = arith.addf %194, %195 : vector<8x32xf32>
    %197 = math.tanh %196 : vector<8x32xf32>
    %198 = arith.mulf %193, %197 : vector<8x32xf32>
    %cst_51 = arith.constant dense<0.000000e+00> : vector<8x128xf32>
    %199 = tpu.matmul %198, %4, %cst_51 {dimension_numbers = #tpu.dot_dimension_numbers<[1], [0], [0], [1], [0, 0, 1, 1], [], []>} : vector<8x32xf32>, vector<32x128xf32>, vector<8x128xf32> -> vector<8x128xf32>
    %200 = arith.addf %46, %199 : vector<8x128xf32>
    %201 = math.tanh %200 : vector<8x128xf32>
    %202 = vector.extract_strided_slice %201 {offsets = [0, 0], sizes = [8, 32], strides = [1, 1]} : vector<8x128xf32> to vector<8x32xf32>
    %cst_52 = arith.constant 5.000000e-01 : f32
    %203 = vector.broadcast %cst_52 : f32 to vector<8x32xf32>
    %204 = arith.mulf %203, %202 : vector<8x32xf32>
    %cst_53 = arith.constant 5.000000e-01 : f32
    %205 = vector.broadcast %cst_53 : f32 to vector<8x32xf32>
    %206 = arith.addf %204, %205 : vector<8x32xf32>
    %207 = vector.extract_strided_slice %201 {offsets = [0, 32], sizes = [8, 32], strides = [1, 1]} : vector<8x128xf32> to vector<8x32xf32>
    %cst_54 = arith.constant 5.000000e-01 : f32
    %208 = vector.broadcast %cst_54 : f32 to vector<8x32xf32>
    %209 = arith.mulf %208, %207 : vector<8x32xf32>
    %cst_55 = arith.constant 5.000000e-01 : f32
    %210 = vector.broadcast %cst_55 : f32 to vector<8x32xf32>
    %211 = arith.addf %209, %210 : vector<8x32xf32>
    %212 = vector.extract_strided_slice %201 {offsets = [0, 64], sizes = [8, 32], strides = [1, 1]} : vector<8x128xf32> to vector<8x32xf32>
    %213 = vector.extract_strided_slice %201 {offsets = [0, 96], sizes = [8, 32], strides = [1, 1]} : vector<8x128xf32> to vector<8x32xf32>
    %cst_56 = arith.constant 5.000000e-01 : f32
    %214 = vector.broadcast %cst_56 : f32 to vector<8x32xf32>
    %215 = arith.mulf %214, %213 : vector<8x32xf32>
    %cst_57 = arith.constant 5.000000e-01 : f32
    %216 = vector.broadcast %cst_57 : f32 to vector<8x32xf32>
    %217 = arith.addf %215, %216 : vector<8x32xf32>
    %218 = arith.mulf %211, %196 : vector<8x32xf32>
    %219 = arith.mulf %206, %212 : vector<8x32xf32>
    %220 = arith.addf %218, %219 : vector<8x32xf32>
    %221 = math.tanh %220 : vector<8x32xf32>
    %222 = arith.mulf %217, %221 : vector<8x32xf32>
    %cst_58 = arith.constant dense<0.000000e+00> : vector<8x128xf32>
    %223 = tpu.matmul %222, %4, %cst_58 {dimension_numbers = #tpu.dot_dimension_numbers<[1], [0], [0], [1], [0, 0, 1, 1], [], []>} : vector<8x32xf32>, vector<32x128xf32>, vector<8x128xf32> -> vector<8x128xf32>
    %224 = arith.addf %52, %223 : vector<8x128xf32>
    %225 = math.tanh %224 : vector<8x128xf32>
    %226 = vector.extract_strided_slice %225 {offsets = [0, 0], sizes = [8, 32], strides = [1, 1]} : vector<8x128xf32> to vector<8x32xf32>
    %cst_59 = arith.constant 5.000000e-01 : f32
    %227 = vector.broadcast %cst_59 : f32 to vector<8x32xf32>
    %228 = arith.mulf %227, %226 : vector<8x32xf32>
    %cst_60 = arith.constant 5.000000e-01 : f32
    %229 = vector.broadcast %cst_60 : f32 to vector<8x32xf32>
    %230 = arith.addf %228, %229 : vector<8x32xf32>
    %231 = vector.extract_strided_slice %225 {offsets = [0, 32], sizes = [8, 32], strides = [1, 1]} : vector<8x128xf32> to vector<8x32xf32>
    %cst_61 = arith.constant 5.000000e-01 : f32
    %232 = vector.broadcast %cst_61 : f32 to vector<8x32xf32>
    %233 = arith.mulf %232, %231 : vector<8x32xf32>
    %cst_62 = arith.constant 5.000000e-01 : f32
    %234 = vector.broadcast %cst_62 : f32 to vector<8x32xf32>
    %235 = arith.addf %233, %234 : vector<8x32xf32>
    %236 = vector.extract_strided_slice %225 {offsets = [0, 64], sizes = [8, 32], strides = [1, 1]} : vector<8x128xf32> to vector<8x32xf32>
    %237 = vector.extract_strided_slice %225 {offsets = [0, 96], sizes = [8, 32], strides = [1, 1]} : vector<8x128xf32> to vector<8x32xf32>
    %cst_63 = arith.constant 5.000000e-01 : f32
    %238 = vector.broadcast %cst_63 : f32 to vector<8x32xf32>
    %239 = arith.mulf %238, %237 : vector<8x32xf32>
    %cst_64 = arith.constant 5.000000e-01 : f32
    %240 = vector.broadcast %cst_64 : f32 to vector<8x32xf32>
    %241 = arith.addf %239, %240 : vector<8x32xf32>
    %242 = arith.mulf %235, %220 : vector<8x32xf32>
    %243 = arith.mulf %230, %236 : vector<8x32xf32>
    %244 = arith.addf %242, %243 : vector<8x32xf32>
    %245 = math.tanh %244 : vector<8x32xf32>
    %246 = arith.mulf %241, %245 : vector<8x32xf32>
    %c0_65 = arith.constant 0 : index
    %c0_66 = arith.constant 0 : index
    %247 = vector.load %arg5[%c0_65, %c0_66] : memref<1x32xf32, #tpu.memory_space<vmem>>, vector<1x32xf32>
    %248 = vector.broadcast %247 : vector<1x32xf32> to vector<8x32xf32>
    %249 = arith.mulf %246, %248 : vector<8x32xf32>
    %cst_67 = arith.constant dense<0.000000e+00> : vector<8xf32>
    %250 = vector.multi_reduction <add>, %249, %cst_67 [1] : vector<8x32xf32> to vector<8xf32>
    %251 = vector.shape_cast %250 : vector<8xf32> to vector<8x1xf32>
    %c0_68 = arith.constant 0 : index
    %c0_69 = arith.constant 0 : index
    %252 = vector.load %arg6[%c0_68, %c0_69] : memref<1x1xf32, #tpu.memory_space<vmem>>, vector<1x1xf32>
    %253 = vector.broadcast %252 : vector<1x1xf32> to vector<8x1xf32>
    %254 = arith.addf %251, %253 : vector<8x1xf32>
    %c0_70 = arith.constant 0 : index
    %c0_71 = arith.constant 0 : index
    %c0_72 = arith.constant 0 : index
    %255 = vector.load %arg7[%c0_70, %c0_71, %c0_72] : memref<1x8x1xf32, #tpu.memory_space<vmem>>, vector<1x8x1xf32>
    %256 = vector.shape_cast %255 : vector<1x8x1xf32> to vector<8x1xf32>
    %257 = vector.shape_cast %254 : vector<8x1xf32> to vector<1x8x1xf32>
    tpu.vector_store %arg7[%c0_70, %c0_71, %c0_72], %257 {strides = array<i32>} : memref<1x8x1xf32, #tpu.memory_space<vmem>>, vector<1x8x1xf32>,
    return
  }
  func.func @transform_0(%arg0: i32) -> (i32, i32, i32) {
    %c0_i32 = arith.constant 0 : i32
    %c0_i32_0 = arith.constant 0 : i32
    %c0_i32_1 = arith.constant 0 : i32
    return %arg0, %c0_i32, %c0_i32_0 : i32, i32, i32
  }
  func.func @transform_1(%arg0: i32) -> (i32, i32) {
    %c0_i32 = arith.constant 0 : i32
    %c0_i32_0 = arith.constant 0 : i32
    %c0_i32_1 = arith.constant 0 : i32
    return %c0_i32, %c0_i32_0 : i32, i32
  }
  func.func @transform_2(%arg0: i32) -> (i32, i32) {
    %c0_i32 = arith.constant 0 : i32
    %c0_i32_0 = arith.constant 0 : i32
    %c0_i32_1 = arith.constant 0 : i32
    return %c0_i32, %c0_i32_0 : i32, i32
  }
  func.func @transform_3(%arg0: i32) -> (i32, i32) {
    %c0_i32 = arith.constant 0 : i32
    %c0_i32_0 = arith.constant 0 : i32
    %c0_i32_1 = arith.constant 0 : i32
    return %c0_i32, %c0_i32_0 : i32, i32
  }
  func.func @transform_4(%arg0: i32) -> (i32, i32) {
    %c0_i32 = arith.constant 0 : i32
    %c0_i32_0 = arith.constant 0 : i32
    %c0_i32_1 = arith.constant 0 : i32
    return %c0_i32, %c0_i32_0 : i32, i32
  }
  func.func @transform_5(%arg0: i32) -> (i32, i32) {
    %c0_i32 = arith.constant 0 : i32
    %c0_i32_0 = arith.constant 0 : i32
    %c0_i32_1 = arith.constant 0 : i32
    return %c0_i32, %c0_i32_0 : i32, i32
  }
  func.func @transform_6(%arg0: i32) -> (i32, i32, i32) {
    %c0_i32 = arith.constant 0 : i32
    %c0_i32_0 = arith.constant 0 : i32
    %c0_i32_1 = arith.constant 0 : i32
    return %arg0, %c0_i32, %c0_i32_0 : i32, i32, i32
  }
}

</mosaic_0001>

<bundles_post_ra>
// kernel: tpu_custom_call.1
= control target key start
LH: loop header
LB: loop body
LE: loop exit
PB: predicated region body
PF: predicated region fallthrough
CT: control target
= control target key end

     0   :  { %s1951_s0 = inlined_call_operand.hbm [shape: f32[2,8,8], index: 0, kind: input, shape index: {}]   ;;  %s1952_s1 = inlined_call_operand.vmem [shape: f32[1,128], index: 1, kind: input, shape index: {}]   ;;  %s1953_s2 = inlined_call_operand.hbm [shape: f32[32,128], index: 2, kind: input, shape index: {}]   ;;  %s1954_s3 = inlined_call_operand.vmem [shape: f32[1,128], index: 3, kind: input, shape index: {}]   ;;  %s1955_s4 = inlined_call_operand.vmem [shape: f32[1,32], index: 4, kind: input, shape index: {}]   ;;  %s1956_s5 = inlined_call_operand.<no memory space> [shape: f32[1,1], index: 5, kind: input, shape index: {}]   ;;  %s1957_s6 = inlined_call_operand.vmem [shape: f32[2,8,1], index: 6, kind: output, shape index: {}]  }
   0x1   :  { %v11_v0 = vstv %s1956_s5 }
   0x2   :  { %12 = vst [vmem:[#allocation2] sm:$0x1] %v11_v0 }
   0x3   :  { %13 = vsyncpa [#allocation4], 0 }
   0x4   :  { %15 = vsyncpa [#allocation4 + $0x1], 0 }
   0x5   :  { %16 = vsyncpa [#allocation6], 0  ;;  %s1680_s23 = smov 0   ;;  %s1682_s24 = smov 0  }
   0x6   :  { %s1684_s25 = smov 0   ;;  %s1686_s26 = smov 0  }
   0x7 LB: > { %s1699_s5 = sadd.s32 4294967295, %s1622_s26   ;;  %p42_p0 = scmp.ne.s32.totalorder %s1614_s24, %s1610_s23  ;;  %s1622_s26 = sphi %s1686_s26, %s1973_s26   ;;  %s1618_s25 = sphi %s1684_s25, %s1972_s25   ;;  %s1614_s24 = sphi %s1682_s24, %s1971_s24   ;;  %s1610_s23 = sphi %s1680_s23, %s1970_s23  }
   0x8   : > { %p1958_p1 = scmp.eq.s32.totalorder %s1699_s5, 0  ;;  %p1222_p2 = scmp.ge.s32.totalorder %s1622_s26, 1 }
   0x9   : > { %p184_p3 = scmp.lt.s32.totalorder %s1622_s26, 3  ;;  %s1624_s29 = smov [#allocation5]  }
   0xa   : > { %p1707_p4 = por %p1958_p1, %p42_p0  ;;  %s199_s30 = sshll.u32 %s1624_s29, 4  ;;  %s200_s30 = int_to_ptr.vmem [resolvable:$true] %s199_s30 }
   0xb   : > { %p1711_p5 = pnand %p1222_p2, %p184_p3  ;;  %s1724_s8 = sadd.s32 1, %s1622_s26  }
   0xc   : > { %s1961_s27 = scalar_select %p1707_p4, 1, 0 }
   0xd   : > { %s1962_s28 = scalar_select %p1711_p5, 1, 0 }
   0xe   : > { %p1426_p6 = pneg %p1711_p5  ;;  %s29_s9 = sadd.s32 1, %s1618_s25 }
   0xf   : > { %s26_s10 = ssub.s32 %s1622_s26, %s1724_s8  ;;  %s1526_s13 = scalar_lea.hbm %s1953_s2, 512 }
  0x10   : > { %p1719_p7 = pnand %p1426_p6, %p1958_p1  ;;  %p1527_p8 = scmp.ne.s32.totalorder %s1953_s2, %s1526_s13 }
  0x11   : > { %p1533_p12 = scmp.lt.u32.totalorder %s1526_s13, %s1953_s2 }
  0x12   : > { %p1528_p9 = pneg %p1719_p7 }
  0x14   : > { %p1529_p10 = pnand %p1528_p9, %p1527_p8 }
  0x16   : > { %p1530_p11 = pneg %p1529_p10 }
  0x18   : > { %p1535_p13 = pnand %p1533_p12, %p1530_p11 }
  0x1a   : > { %1538 = shalt.err (!%p1535_p13)
}
  0x1b   : > { %s1539_s18 = scalar_lea.vmem %s200_s30, 512  ;;  %p1547_p6 = scmp.lt.s32.totalorder %s200_s30, %s200_s30 }
  0x1c   : > { %p1540_p0 = scmp.ne.s32.totalorder %s200_s30, %s1539_s18  ;;  %p1548_p1 = scmp.lt.s32.totalorder %s1539_s18, %s1539_s18 }
  0x1e   : > { %p1542_p2 = pnand %p1540_p0, %p1528_p9  ;;  %p1549_p4 = por %p1548_p1, %p1547_p6 }
  0x20   : > { %p1543_p3 = pneg %p1542_p2 }
  0x22   : > { %p1550_p5 = pnand %p1549_p4, %p1543_p3 }
  0x24   : > { %1553 = shalt.err (!%p1550_p5)
}
  0x25   : > { %s1625_s19 = smov 128   ;;  %s1626_s20 = smov 8  }
  0x26   : > { %1429 = dma.hbm_to_vmem [thread:$0]  (!%p1719_p7), %s1953_s2, 512, %s200_s30, [#allocation6], %s1625_s19, %s1625_s19, %s1626_s20  }
  0x27   : > { %p27_p8 = scmp.eq.s32.totalorder %s26_s10, 0  ;;  %p36_p9 = scmp.ne.s32.totalorder %s1618_s25, %s1614_s24 }
  0x28   : > { %p37_p1 = scmp.eq.s32.totalorder %s1622_s26, 0  ;;  %p1435_p4 = scmp.lt.s32.totalorder %s1622_s26, 2 }
  0x29   : > { %s1750_s23 = scalar_select %p27_p8, %s1618_s25, %s29_s9  }
  0x2a   : > { %p38_p5 = por %p37_p1, %p36_p9  ;;  %s222_s29 = sand.u32 1, %s1618_s25  }
  0x2b   : > { %s1225_s11 = sshll.u32 %s222_s29, 3  ;;  %s1226_s12 = sshll.u32 %s1622_s26, 7 }
  0x2c   : > { %s1757_s15 = scalar_lea.hbm %s1951_s0, %s1226_s12  ;;  %s226_s30 = scalar_lea.vmem [#allocation3], %s1225_s11 }
  0x2d   : > { %s233_s7 = sshll.u32 %s226_s30, 4  ;;  %p1761_p7 = pnand %p1435_p4, %p38_p5  ;;  %s1759_s7 = int_to_ptr.vmem [resolvable:$true] %s233_s7 }
  0x2e   : > { %s223_s26 = scalar_lea.sflag [#allocation4], %s222_s29  ;;  %s1554_s10 = scalar_lea.hbm %s1757_s15, 128 }
  0x2f   : > { %p1555_p10 = scmp.ne.s32.totalorder %s1757_s15, %s1554_s10  ;;  %p1556_p11 = pneg %p1761_p7 }
  0x30   : > { %s1559_s18 = scalar_lea.hbm %s1951_s0, 256  ;;  %p1560_p0 = scmp.lt.u32.totalorder %s1757_s15, %s1951_s0 }
  0x31   : > { %p1557_p12 = pnand %p1556_p11, %p1555_p10  ;;  %p1561_p2 = scmp.lt.u32.totalorder %s1559_s18, %s1554_s10 }
  0x32   : > { %p1563_p6 = scmp.lt.u32.totalorder %s1554_s10, %s1757_s15 }
  0x33   : > { %p1558_p13 = pneg %p1557_p12  ;;  %p1562_p3 = por %p1561_p2, %p1560_p0 }
  0x35   : > { %p1564_p8 = por %p1563_p6, %p1562_p3 }
  0x37   : > { %p1565_p9 = pnand %p1564_p8, %p1558_p13 }
  0x39   : > { %1568 = shalt.err (!%p1565_p9)
}
  0x3a   : > { %s1569_s21 = scalar_lea.vmem %s1759_s7, 128  ;;  %s1627_s22 = smov [#allocation3]  }
  0x3b   : > { %p1570_p1 = scmp.ne.s32.totalorder %s1759_s7, %s1569_s21  ;;  %s1574_s29 = sshll.u32 %s1627_s22, 4  ;;  %s1575_s29 = int_to_ptr.vmem [resolvable:$false] %s1574_s29 }
  0x3c   : > { %s1576_s11 = scalar_lea.vmem %s1575_s29, 256  ;;  %p1577_p10 = scmp.lt.s32.totalorder %s1759_s7, %s1575_s29 }
  0x3d   : > { %p1572_p4 = pnand %p1570_p1, %p1556_p11  ;;  %p1578_p12 = scmp.lt.s32.totalorder %s1576_s11, %s1569_s21 }
  0x3f   : > { %p1573_p5 = pneg %p1572_p4  ;;  %p1579_p0 = por %p1578_p12, %p1577_p10 }
  0x41   : > { %p1580_p2 = pnand %p1579_p0, %p1573_p5 }
  0x43   : > { %1583 = shalt.err (!%p1580_p2)
}
  0x44   : > { %1433 = dma.hbm_to_vmem [thread:$0]  (!%p1761_p7), %s1757_s15, 128, %s1759_s7, %s223_s26  }
  0x45   : > { %p1965_p13 = scmp.ne.s32.totalorder %s1962_s28, 0 }
  0x46   : > { %s244_s12 = sand.u32 (!%p1965_p13), 1, %s1614_s24   ;;  %p1966_p11 = scmp.ne.s32.totalorder (!%p1965_p13), %s1961_s27, 0 }
  0x47   : > { %242 = sbr.rel (%p1965_p13) target bundleno = 5857 (0x16e1), region = 44  ;;  %s1228_s13 = sshll.u32 (!%p1965_p13), %s244_s12, 3 }
  0x48   : > { %s245_s14 = scalar_lea.sflag (!%p1965_p13), [#allocation4], %s244_s12  ;;  %s248_s30 = scalar_lea.vmem (!%p1965_p13), [#allocation3], %s1228_s13 }
  0x4e   : > { %1601 = dma.done.wait (%p1966_p11), %s245_s14, 128  }
  0x4f   : > { %1603 = vsyncadd (%p1966_p11), %s245_s14, 4294967168  ;;  %p1967_p3 = scmp.eq.s32.totalorder %s1699_s5, 0 }
  0x51   : > { %1605 = dma.done.wait (%p1967_p3), [#allocation6], 512   ;;  %p1968_p6 = pmov %p1967_p3 }
  0x52   : > { %v1628_v1 = vmov 0.0|0.0   ;;  %vm1629_vm0 = vmmov 0   ;;  %v1630_v2 = vmov 0.0   ;;  %v1631_v3 = vmov 0   ;;  %v287_v4 = vld [vmem:[#allocation5] sm:$0xff]  ;;  %v288_v5 = vld [vmem:[#allocation5 + $0x8] sm:$0xff] }
  0x53   : > { %1607 = vsyncadd (%p1968_p6), [#allocation6], 4294966784  ;;  %1372 = vmatprep.subr.bf16.mxu0 %v1628_v1  ;;  %1292 = vmatprep.mubr.msk.f32.mxu0 %vm1629_vm0, %v1630_v2  ;;  %v289_v6 = vld [vmem:[#allocation5 + $0x10] sm:$0xff]  ;;  %v1807_v7 = vpack.c.bf16 %v288_v5, %v287_v4  ;;  %v290_v8 = vld [vmem:[#allocation5 + $0x18] sm:$0xff]  ;;  %s1632_s9 = smov 64   ;;  %s1633_s26 = smov 32  }
  0x54   : > { %1486 = vset.pattern.permute.xlu0 %v1631_v3  ;;  %1378 = vmatprep.subr.bf16.mxu1 %v1628_v1  ;;  %v1809_v9 = vld [vmem:[%s248_s30] sm:$0xff]  ;;  %v1813_v10 = vpack.c.bf16 %v290_v8, %v289_v6  ;;  %v1832_v11 = vld [vmem:[%s1952_s1] ss:$0 sm:$0xff]  ;;  %v1634_v28 = vmov 1   ;;  %vm352_vm1 = vcmask 261120   ;;  %v1635_v47 = vmov 2  }
  0x55   : > { %1303 = vmatprep.mubr.msk.f32.mxu1 %vm1629_vm0, %v1630_v2  ;;  %293 = vperm.xlu0 %1486, %v1809_v9   ;;  %v1838_v14 = vld [vmem:[%s1954_s3] ss:$0 sm:$0xff]  ;;  %v1636_v4 = vmov 3   ;;  %s1641_s17 = smov 96   ;;  %p280_p7 = scmp.lt.s32.totalorder %s1699_s5, 1  ;;  %vm1144_vm2 = vcmask 7168  }
  0x56   : > { %1374 = vmatpush3.bf16.msra.mxu0 %v1807_v7  ;;  %1380 = vmatpush3.bf16.msra.mxu1 %v1807_v7 }
  0x57   : > { %1375 = vmatprep.subr.bf16.mxu0 %v1628_v1  ;;  %1381 = vmatprep.subr.bf16.mxu1 %v1628_v1  ;;  %s1975_s5 = smov (!%p280_p7, %s1699_s5), 1 }
  0x58   : > { %1487 = vset.pattern.permute.xlu1 %v1634_v28  ;;  %v1637_v28 = vmov 4   ;;  %s1230_s18 = sshll.u32 %s1975_s5, 3 }
  0x59   : > { %1488 = vset.pattern.permute.xlu0 %v1635_v47  ;;  %v1638_v47 = vmov 5   ;;  %s283_s21 = scalar_lea.vmem %s1957_s6, %s1230_s18 }
  0x5a   : > { %1377 = vmatpush3.bf16.msra.mxu0 %v1813_v10  ;;  %1383 = vmatpush3.bf16.msra.mxu1 %v1813_v10 }
  0x5b   : > { %1384 = vmatprep.subr.bf16.mxu0 %v1628_v1  ;;  %1390 = vmatprep.subr.bf16.mxu1 %v1628_v1 }
  0x5d   : > { %1293 = vmatmul.mubr.f32.vlgmr.msra.gmra.mrb[0].mxu0 %v1630_v2 }
  0x5e   : > { %1386 = vmatpush3.bf16.msra.mxu0 %v1807_v7  ;;  %1314 = vmatprep.mubr.msk.f32.mxu0 %vm1629_vm0, %v1630_v2 }
  0x5f   : > { %1387 = vmatprep.subr.bf16.mxu0 %v1628_v1 }
  0x62   : > { %1389 = vmatpush3.bf16.msra.mxu0 %v1813_v10 }
  0x63   : > { %1396 = vmatprep.subr.bf16.mxu0 %v1628_v1 }
  0xd4   : > { %v294_v12 = vpop.permute.xlu0 %293 }
  0xd5   : > { %v302_v13 = vmul.f32 %v1832_v11, %v294_v12 }
  0xd7   : > { %v309_v15 = vadd.f32 %v1838_v14, %v302_v13 }
 0x130   : > { %v422_v16 = vpop.f32.mrb[0].mxu0 }
 0x131   : > { %v426_v17 = vadd.f32 %v422_v16, %v309_v15  ;;  %v1294_v18 = vpop.f32.mrb[1].mxu0 }
 0x133   : > { %1494 = vtanh.f32 %v426_v17 }
 0x13d   : > { %v1495_v19 = vpop.eup %1494 }
 0x13e   : > { %432 = vrot.lane.b32.xlu0 %v1495_v19, %s1632_s9  ;;  %v428_v20 = vmul.f32 0.5, %v1495_v19 }
 0x140   : > { %v429_v21 = vadd.f32 0.5, %v428_v20 }
 0x142   : > { %v430_v24 = vmul.f32 0.0, %v429_v21 }
 0x1b0   : > { %v433_v22 = vpop.permute.xlu0 %432 }
 0x1b1   : > { %v435_v23 = vmul.f32 %v433_v22, %v429_v21 }
 0x1b3   : > { %437 = vrot.lane.b32.xlu1 %v435_v23, %s1633_s26 }
 0x225   : > { %v438_v25 = vpop.permute.xlu1 %437 }
 0x226   : > { %v440_v26 = vadd.f32 %v438_v25, %v430_v24 }
 0x228   : > { %1496 = vtanh.f32 %v440_v26 }
 0x232   : > { %v1497_v27 = vpop.eup %1496 }
 0x233   : > { %443 = vrot.lane.b32.xlu1 %v1497_v27, %s1632_s9 }
 0x237   : > { %311 = vperm.xlu1 %1487, %v1809_v9  }
 0x2a5   : > { %v444_v29 = vpop.permute.xlu1 %443 }
 0x2a6   : > { %v446_v30 = vmul.f32 %v444_v29, %v429_v21 }
 0x2a8   : > { %448 = vrot.lane.b32.xlu0 %v446_v30, %s1633_s26 }
 0x2b6   : > { %v312_v32 = vpop.permute.xlu1 %311 }
 0x2b7   : > { %v314_v33 = vmul.f32 %v1832_v11, %v312_v32 }
 0x2b9   : > { %v315_v34 = vadd.f32 %v1838_v14, %v314_v33 }
 0x31a   : > { %v449_v31 = vpop.permute.xlu0 %448 }
 0x31b   : > { %1304 = vmatmul.mubr.msk.f32.vlgmr.msra.gmra.mrb[0].mxu1 %vm352_vm1, %v449_v31 }
 0x31c   : > { %1392 = vmatpush3.bf16.msra.mxu1 %v1807_v7  ;;  %1325 = vmatprep.mubr.msk.f32.mxu1 %vm1629_vm0, %v1630_v2 }
 0x31d   : > { %1393 = vmatprep.subr.bf16.mxu1 %v1628_v1 }
 0x320   : > { %1395 = vmatpush3.bf16.msra.mxu1 %v1813_v10 }
 0x321   : > { %1402 = vmatprep.subr.bf16.mxu1 %v1628_v1 }
 0x3ee   : > { %v518_v35 = vpop.f32.mrb[0].mxu1 }
 0x3ef   : > { %v522_v36 = vadd.f32 %v518_v35, %v315_v34  ;;  %v1305_v37 = vpop.f32.mrb[1].mxu1 }
 0x3f1   : > { %1498 = vtanh.f32 %v522_v36 }
 0x3fb   : > { %v1499_v38 = vpop.eup %1498 }
 0x3fc   : > { %528 = vrot.lane.b32.xlu0 %v1499_v38, %s1632_s9  ;;  %v524_v39 = vmul.f32 0.5, %v1499_v38 }
 0x3fe   : > { %v525_v40 = vadd.f32 0.5, %v524_v39 }
 0x400   : > { %v526_v43 = vmul.f32 %v525_v40, %v440_v26 }
 0x46e   : > { %v529_v41 = vpop.permute.xlu0 %528 }
 0x46f   : > { %v531_v42 = vmul.f32 %v529_v41, %v525_v40 }
 0x471   : > { %533 = vrot.lane.b32.xlu1 %v531_v42, %s1633_s26 }
 0x4e3   : > { %v534_v44 = vpop.permute.xlu1 %533 }
 0x4e4   : > { %v536_v45 = vadd.f32 %v534_v44, %v526_v43 }
 0x4e6   : > { %1500 = vtanh.f32 %v536_v45 }
 0x4f0   : > { %v1501_v46 = vpop.eup %1500 }
 0x4f1   : > { %539 = vrot.lane.b32.xlu0 %v1501_v46, %s1632_s9 }
 0x4f5   : > { %317 = vperm.xlu0 %1488, %v1809_v9  }
 0x4f9   : > { %1489 = vset.pattern.permute.xlu0 %v1636_v4 }
 0x563   : > { %v540_v48 = vpop.permute.xlu0 %539 }
 0x564   : > { %v542_v49 = vmul.f32 %v540_v48, %v525_v40 }
 0x566   : > { %544 = vrot.lane.b32.xlu1 %v542_v49, %s1633_s26 }
 0x574   : > { %v318_v51 = vpop.permute.xlu0 %317 }
 0x575   : > { %v320_v52 = vmul.f32 %v1832_v11, %v318_v51 }
 0x577   : > { %v321_v53 = vadd.f32 %v1838_v14, %v320_v52 }
 0x5d8   : > { %v545_v50 = vpop.permute.xlu1 %544 }
 0x5d9   : > { %1315 = vmatmul.mubr.msk.f32.vlgmr.msra.gmra.mrb[2].mxu0 %vm352_vm1, %v545_v50 }
 0x5da   : > { %1398 = vmatpush3.bf16.msra.mxu0 %v1807_v7  ;;  %1336 = vmatprep.mubr.msk.f32.mxu0 %vm1629_vm0, %v1630_v2 }
 0x5db   : > { %1399 = vmatprep.subr.bf16.mxu0 %v1628_v1 }
 0x5de   : > { %1401 = vmatpush3.bf16.msra.mxu0 %v1813_v10 }
 0x5df   : > { %1408 = vmatprep.subr.bf16.mxu0 %v1628_v1 }
 0x6ac   : > { %v614_v54 = vpop.f32.mrb[2].mxu0 }
 0x6ad   : > { %v618_v55 = vadd.f32 %v614_v54, %v321_v53  ;;  %v1316_v56 = vpop.f32.mrb[3].mxu0 }
 0x6af   : > { %1502 = vtanh.f32 %v618_v55 }
 0x6b9   : > { %v1503_v57 = vpop.eup %1502 }
 0x6ba   : > { %624 = vrot.lane.b32.xlu1 %v1503_v57, %s1632_s9  ;;  %v620_v58 = vmul.f32 0.5, %v1503_v57 }
 0x6bc   : > { %v621_v59 = vadd.f32 0.5, %v620_v58 }
 0x6be   : > { %v622_v62 = vmul.f32 %v621_v59, %v536_v45 }
 0x72c   : > { %v625_v60 = vpop.permute.xlu1 %624 }
 0x72d   : > { %v627_v61 = vmul.f32 %v625_v60, %v621_v59 }
 0x72f   : > { %629 = vrot.lane.b32.xlu1 %v627_v61, %s1633_s26 }
 0x7a1   : > { %v630_v63 = vpop.permute.xlu1 %629 }
 0x7a2   : > { %v632_v0 = vadd.f32 %v630_v63, %v622_v62  ;;  %v1639_v62 = vmov 6  }
 0x7a4   : > { %1504 = vtanh.f32 %v632_v0 }
 0x7ae   : > { %v1505_v3 = vpop.eup %1504 }
 0x7af   : > { %635 = vrot.lane.b32.xlu0 %v1505_v3, %s1632_s9 }
 0x7b3   : > { %323 = vperm.xlu0 %1489, %v1809_v9  }
 0x7b7   : > { %1490 = vset.pattern.permute.xlu0 %v1637_v28 }
 0x821   : > { %v636_v5 = vpop.permute.xlu0 %635 }
 0x822   : > { %v638_v6 = vmul.f32 %v636_v5, %v621_v59 }
 0x824   : > { %640 = vrot.lane.b32.xlu1 %v638_v6, %s1633_s26 }
 0x832   : > { %v324_v12 = vpop.permute.xlu0 %323 }
 0x833   : > { %v326_v13 = vmul.f32 %v1832_v11, %v324_v12 }
 0x835   : > { %v327_v15 = vadd.f32 %v1838_v14, %v326_v13 }
 0x896   : > { %v641_v8 = vpop.permute.xlu1 %640 }
 0x897   : > { %1326 = vmatmul.mubr.msk.f32.vlgmr.msra.gmra.mrb[2].mxu1 %vm352_vm1, %v641_v8 }
 0x898   : > { %1404 = vmatpush3.bf16.msra.mxu1 %v1807_v7  ;;  %1347 = vmatprep.mubr.msk.f32.mxu1 %vm1629_vm0, %v1630_v2 }
 0x899   : > { %1405 = vmatprep.subr.bf16.mxu1 %v1628_v1 }
 0x89c   : > { %1407 = vmatpush3.bf16.msra.mxu1 %v1813_v10 }
 0x89d   : > { %1414 = vmatprep.subr.bf16.mxu1 %v1628_v1 }
 0x96a   : > { %v710_v16 = vpop.f32.mrb[2].mxu1 }
 0x96b   : > { %v714_v17 = vadd.f32 %v710_v16, %v327_v15  ;;  %v1327_v18 = vpop.f32.mrb[3].mxu1 }
 0x96d   : > { %1506 = vtanh.f32 %v714_v17 }
 0x977   : > { %v1507_v19 = vpop.eup %1506 }
 0x978   : > { %720 = vrot.lane.b32.xlu1 %v1507_v19, %s1632_s9  ;;  %v716_v20 = vmul.f32 0.5, %v1507_v19 }
 0x97a   : > { %v717_v21 = vadd.f32 0.5, %v716_v20 }
 0x97c   : > { %v718_v24 = vmul.f32 %v717_v21, %v632_v0 }
 0x9ea   : > { %v721_v22 = vpop.permute.xlu1 %720 }
 0x9eb   : > { %v723_v23 = vmul.f32 %v721_v22, %v717_v21 }
 0x9ed   : > { %725 = vrot.lane.b32.xlu1 %v723_v23, %s1633_s26 }
 0xa5f   : > { %v726_v25 = vpop.permute.xlu1 %725 }
 0xa60   : > { %v728_v26 = vadd.f32 %v726_v25, %v718_v24  ;;  %v1640_v24 = vmov 7  }
 0xa62   : > { %1508 = vtanh.f32 %v728_v26 }
 0xa6c   : > { %v1509_v27 = vpop.eup %1508 }
 0xa6d   : > { %731 = vrot.lane.b32.xlu0 %v1509_v27, %s1632_s9 }
 0xa71   : > { %329 = vperm.xlu0 %1490, %v1809_v9  }
 0xa75   : > { %1491 = vset.pattern.permute.xlu0 %v1638_v47  ;;  %v1241_v47 = vld [vmem:[#allocation2] ss:$0 sm:$0xff] }
 0xadf   : > { %v732_v29 = vpop.permute.xlu0 %731 }
 0xae0   : > { %v734_v30 = vmul.f32 %v732_v29, %v717_v21 }
 0xae2   : > { %736 = vrot.lane.b32.xlu1 %v734_v30, %s1633_s26 }
 0xaf0   : > { %v330_v32 = vpop.permute.xlu0 %329 }
 0xaf1   : > { %v332_v33 = vmul.f32 %v1832_v11, %v330_v32 }
 0xaf3   : > { %v333_v34 = vadd.f32 %v1838_v14, %v332_v33 }
 0xb54   : > { %v737_v31 = vpop.permute.xlu1 %736 }
 0xb55   : > { %1337 = vmatmul.mubr.msk.f32.vlgmr.msra.gmra.mrb[4].mxu0 %vm352_vm1, %v737_v31 }
 0xb56   : > { %1410 = vmatpush3.bf16.msra.mxu0 %v1807_v7  ;;  %1358 = vmatprep.mubr.msk.f32.mxu0 %vm1629_vm0, %v1630_v2 }
 0xb57   : > { %1411 = vmatprep.subr.bf16.mxu0 %v1628_v1 }
 0xb5a   : > { %1413 = vmatpush3.bf16.msra.mxu0 %v1813_v10 }
 0xc28   : > { %v806_v35 = vpop.f32.mrb[4].mxu0 }
 0xc29   : > { %v810_v36 = vadd.f32 %v806_v35, %v333_v34  ;;  %v1338_v37 = vpop.f32.mrb[5].mxu0 }
 0xc2b   : > { %1510 = vtanh.f32 %v810_v36 }
 0xc35   : > { %v1511_v38 = vpop.eup %1510 }
 0xc36   : > { %816 = vrot.lane.b32.xlu1 %v1511_v38, %s1632_s9  ;;  %v812_v39 = vmul.f32 0.5, %v1511_v38  ;;  %v1240_v38 = vld [vmem:[%s1955_s4] ss:$0 sm:$0xff] }
 0xc38   : > { %v813_v40 = vadd.f32 0.5, %v812_v39 }
 0xc3a   : > { %v814_v43 = vmul.f32 %v813_v40, %v728_v26 }
 0xca8   : > { %v817_v41 = vpop.permute.xlu1 %816 }
 0xca9   : > { %v819_v42 = vmul.f32 %v817_v41, %v813_v40 }
 0xcab   : > { %821 = vrot.lane.b32.xlu1 %v819_v42, %s1633_s26 }
 0xd1d   : > { %v822_v44 = vpop.permute.xlu1 %821 }
 0xd1e   : > { %v824_v45 = vadd.f32 %v822_v44, %v814_v43 }
 0xd20   : > { %1512 = vtanh.f32 %v824_v45 }
 0xd2a   : > { %v1513_v46 = vpop.eup %1512 }
 0xd2b   : > { %827 = vrot.lane.b32.xlu0 %v1513_v46, %s1632_s9 }
 0xd2f   : > { %335 = vperm.xlu0 %1491, %v1809_v9  }
 0xd33   : > { %1492 = vset.pattern.permute.xlu0 %v1639_v62 }
 0xd9d   : > { %v828_v48 = vpop.permute.xlu0 %827 }
 0xd9e   : > { %v830_v49 = vmul.f32 %v828_v48, %v813_v40 }
 0xda0   : > { %832 = vrot.lane.b32.xlu1 %v830_v49, %s1633_s26 }
 0xdae   : > { %v336_v51 = vpop.permute.xlu0 %335 }
 0xdaf   : > { %v338_v52 = vmul.f32 %v1832_v11, %v336_v51 }
 0xdb1   : > { %v339_v53 = vadd.f32 %v1838_v14, %v338_v52 }
 0xe12   : > { %v833_v50 = vpop.permute.xlu1 %832 }
 0xe13   : > { %1348 = vmatmul.mubr.msk.f32.vlgmr.msra.gmra.mrb[4].mxu1 %vm352_vm1, %v833_v50 }
 0xe14   : > { %1416 = vmatpush3.bf16.msra.mxu1 %v1807_v7  ;;  %1369 = vmatprep.mubr.msk.f32.mxu1 %vm1629_vm0, %v1630_v2 }
 0xe15   : > { %1417 = vmatprep.subr.bf16.mxu1 %v1628_v1 }
 0xe18   : > { %1419 = vmatpush3.bf16.msra.mxu1 %v1813_v10 }
 0xee6   : > { %v902_v54 = vpop.f32.mrb[4].mxu1 }
 0xee7   : > { %v906_v55 = vadd.f32 %v902_v54, %v339_v53  ;;  %v1349_v56 = vpop.f32.mrb[5].mxu1 }
 0xee9   : > { %1514 = vtanh.f32 %v906_v55 }
 0xef3   : > { %v1515_v57 = vpop.eup %1514 }
 0xef4   : > { %912 = vrot.lane.b32.xlu1 %v1515_v57, %s1632_s9  ;;  %v908_v7 = vmul.f32 0.5, %v1515_v57 }
 0xef6   : > { %v909_v58 = vadd.f32 0.5, %v908_v7 }
 0xef8   : > { %v910_v1 = vmul.f32 %v909_v58, %v824_v45 }
 0xf66   : > { %v913_v59 = vpop.permute.xlu1 %912 }
 0xf67   : > { %v915_v2 = vmul.f32 %v913_v59, %v909_v58 }
 0xf69   : > { %917 = vrot.lane.b32.xlu1 %v915_v2, %s1633_s26 }
 0xfdb   : > { %v918_v10 = vpop.permute.xlu1 %917 }
 0xfdc   : > { %v920_v60 = vadd.f32 %v918_v10, %v910_v1 }
 0xfde   : > { %1516 = vtanh.f32 %v920_v60 }
 0xfe8   : > { %v1517_v61 = vpop.eup %1516 }
 0xfe9   : > { %923 = vrot.lane.b32.xlu0 %v1517_v61, %s1632_s9 }
 0xfed   : > { %341 = vperm.xlu0 %1492, %v1809_v9  }
 0xff1   : > { %1493 = vset.pattern.permute.xlu0 %v1640_v24 }
0x105b   : > { %v924_v63 = vpop.permute.xlu0 %923 }
0x105c   : > { %v926_v0 = vmul.f32 %v924_v63, %v909_v58 }
0x105e   : > { %928 = vrot.lane.b32.xlu1 %v926_v0, %s1633_s26 }
0x106c   : > { %v342_v4 = vpop.permute.xlu0 %341 }
0x106d   : > { %v344_v5 = vmul.f32 %v1832_v11, %v342_v4 }
0x106f   : > { %v345_v6 = vadd.f32 %v1838_v14, %v344_v5 }
0x10d0   : > { %v929_v3 = vpop.permute.xlu1 %928 }
0x10d1   : > { %1359 = vmatmul.mubr.msk.f32.vlgmr.msra.gmra.mrb[6].mxu0 %vm352_vm1, %v929_v3 }
0x11a4   : > { %v998_v8 = vpop.f32.mrb[6].mxu0 }
0x11a5   : > { %v1002_v12 = vadd.f32 %v998_v8, %v345_v6  ;;  %v1360_v13 = vpop.f32.mrb[7].mxu0 }
0x11a7   : > { %1518 = vtanh.f32 %v1002_v12 }
0x11b1   : > { %v1519_v15 = vpop.eup %1518 }
0x11b2   : > { %1008 = vrot.lane.b32.xlu1 %v1519_v15, %s1632_s9  ;;  %v1004_v16 = vmul.f32 0.5, %v1519_v15 }
0x11b4   : > { %v1005_v17 = vadd.f32 0.5, %v1004_v16 }
0x11b6   : > { %v1006_v20 = vmul.f32 %v1005_v17, %v920_v60 }
0x1224   : > { %v1009_v18 = vpop.permute.xlu1 %1008 }
0x1225   : > { %v1011_v19 = vmul.f32 %v1009_v18, %v1005_v17 }
0x1227   : > { %1013 = vrot.lane.b32.xlu1 %v1011_v19, %s1633_s26 }
0x1299   : > { %v1014_v21 = vpop.permute.xlu1 %1013 }
0x129a   : > { %v1016_v22 = vadd.f32 %v1014_v21, %v1006_v20 }
0x129c   : > { %1520 = vtanh.f32 %v1016_v22 }
0x12a6   : > { %v1521_v23 = vpop.eup %1520 }
0x12a7   : > { %1019 = vrot.lane.b32.xlu0 %v1521_v23, %s1632_s9 }
0x12ab   : > { %347 = vperm.xlu0 %1493, %v1809_v9  }
0x1319   : > { %v1020_v25 = vpop.permute.xlu0 %1019 }
0x131a   : > { %v1022_v26 = vmul.f32 %v1020_v25, %v1005_v17 }
0x131c   : > { %1024 = vrot.lane.b32.xlu1 %v1022_v26, %s1633_s26 }
0x132a   : > { %v348_v28 = vpop.permute.xlu0 %347 }
0x132b   : > { %v350_v29 = vmul.f32 %v1832_v11, %v348_v28 }
0x132d   : > { %v351_v30 = vadd.f32 %v1838_v14, %v350_v29 }
0x138e   : > { %v1025_v27 = vpop.permute.xlu1 %1024 }
0x138f   : > { %1370 = vmatmul.mubr.msk.f32.vlgmr.msra.gmra.mrb[6].mxu1 %vm352_vm1, %v1025_v27 }
0x1462   : > { %v1094_v31 = vpop.f32.mrb[6].mxu1 }
0x1463   : > { %v1098_v32 = vadd.f32 %v1094_v31, %v351_v30  ;;  %v1371_v33 = vpop.f32.mrb[7].mxu1 }
0x1465   : > { %1522 = vtanh.f32 %v1098_v32 }
0x146f   : > { %v1523_v34 = vpop.eup %1522 }
0x1470   : > { %1104 = vrot.lane.b32.xlu1 %v1523_v34, %s1632_s9  ;;  %v1100_v9 = vmul.f32 0.5, %v1523_v34 }
0x1472   : > { %v1101_v35 = vadd.f32 0.5, %v1100_v9 }
0x1474   : > { %v1102_v11 = vmul.f32 %v1101_v35, %v1016_v22 }
0x14e2   : > { %v1105_v36 = vpop.permute.xlu1 %1104 }
0x14e3   : > { %v1107_v37 = vmul.f32 %v1105_v36, %v1101_v35 }
0x14e5   : > { %1109 = vrot.lane.b32.xlu1 %v1107_v37, %s1633_s26 }
0x14e9   : > { %1125 = vrot.lane.b32.xlu1 %v1240_v38, %s1641_s17 }
0x1557   : > { %v1110_v14 = vpop.permute.xlu1 %1109 }
0x1558   : > { %v1112_v39 = vadd.f32 %v1110_v14, %v1102_v11 }
0x155a   : > { %1524 = vtanh.f32 %v1112_v39 }
0x155b   : > { %v1126_v42 = vpop.permute.xlu1 %1125 }
0x1564   : > { %v1525_v40 = vpop.eup %1524 }
0x1565   : > { %1115 = vrot.lane.b32.xlu0 %v1525_v40, %s1632_s9 }
0x15d7   : > { %v1116_v41 = vpop.permute.xlu0 %1115 }
0x15d8   : > { %v1118_v43 = vmul.f32 %v1116_v41, %v1101_v35 }
0x15da   : > { %v1128_v44 = vmul.f32 %v1126_v42, %v1118_v43 }
0x15dc   : > { %1130 = vrot.lane.b32.xlu0 %v1128_v44, %s1633_s26 }
0x164e   : > { %v1131_v45 = vpop.permute.xlu0 %1130 }
0x164f   : > { %v1133_v46 = vsel %vm352_vm1, %v1131_v45, 0.0 }
0x1650   : > { %1134 = vadd.xlane.f32.xlu1 %v1133_v46 }
0x16dd   : > { %v1135_v48 = vpop.xlane.xlu1 %1134 }
0x16de   : > { %v1143_v49 = vadd.f32 %v1241_v47, %v1135_v48 }
0x16e0   : > { %1145 = vst.msk [vmem:[%s283_s21] sm:$0xff] %vm1144_vm2, %v1143_v49 }
0x16e1 PF: > { %s1969_s22 = smov %s1750_s23  ;;  %p19_p8 = scmp.ge.s32.totalorder %s1724_s8, 4  }
0x16e2   : > { %s1970_s23 = smov %s1614_s24  ;;  %s1971_s24 = smov %s1618_s25 }
0x16e3   : > { %s1972_s25 = smov %s1969_s22  ;;  %s1973_s26 = smov %s1724_s8 }
0x16e4   :  { %21 = sbr.rel (!%p19_p8) target bundleno = 7 (0x7), region = 88 }
0x16eb   :  { %1165 = vsyncpa [#allocation4], 1 }
0x16ec   :  { %1167 = vsyncpa [#allocation4 + $0x1], 1 }
0x16ed   :  { %1168 = vsyncpa [#allocation6], 1 }

</bundles_post_ra>
